<compile_context>
chip_gen: v5e
topology: v5e:2x2
jax: 0.10.0
libtpu: 0.0.40
codegen_flags: <defaults>
</compile_context>

<pallas_src>
import jax
import jax.numpy as jnp
from jax.experimental import pallas as pl
from jax.experimental.pallas import tpu as pltpu


def _identity_copy_kernel(obs_ref, out_ref):
    # Stateless pass-through: the agent stub applies no transformation to the
    # observation (reference body is `pass`).
    out_ref[...] = obs_ref[...]


def _pick_row_tile(rows: int, lane: int, itemsize: int) -> int:
    """Largest row tile that (a) divides `rows` exactly, (b) is a multiple of
    8 (sublane), and (c) keeps a block at or under ~2 MiB so that the
    double-buffered in+out blocks stay far below v7x's 64 MiB VMEM."""
    if rows % 8 != 0:
        # Full extent — legal because block dims equal the full array dims.
        return rows
    max_rows = max(8, (2 * 1024 * 1024) // max(1, lane * itemsize))
    tile = 8
    t = 8
    limit = min(rows, max_rows)
    while t <= limit:
        if rows % t == 0:
            tile = t
        t += 8
    return tile


def _forward_impl(observation: jax.Array) -> jax.Array:
    batch, obs_size = observation.shape
    total = batch * obs_size
    itemsize = jnp.dtype(observation.dtype).itemsize

    # Lane-dense view: present a 128-wide last dim to the kernel when the
    # element count allows it (unmasked full-width vector stores).
    if total % 128 == 0:
        rows, lane = total // 128, 128
        x = observation.reshape(rows, lane)
    else:
        rows, lane = batch, obs_size
        x = observation

    tile = _pick_row_tile(rows, lane, itemsize)
    grid = (rows // tile,)

    out = pl.pallas_call(
        _identity_copy_kernel,
        out_shape=jax.ShapeDtypeStruct((rows, lane), x.dtype),
        grid_spec=pl.GridSpec(
            grid=grid,
            in_specs=[pl.BlockSpec((tile, lane), lambda i: (i, 0))],
            out_specs=pl.BlockSpec((tile, lane), lambda i: (i, 0)),
        ),
        # Let XLA alias the output onto the input buffer and elide the copy
        # where possible — the copy is 100% of this op's cost.
        input_output_aliases={0: 0},
        compiler_params=pltpu.CompilerParams(
            dimension_semantics=("parallel",),
        ),
    )(x)

    return out.reshape(batch, obs_size)


# jit so the lane-dense reshape fuses and the aliased pallas output refers to
# an intermediate value inside the computation (no caller-visible donation).
mad_agent_v0_forward = jax.jit(_forward_impl)


class MadAgentV0:
    """JAX/Pallas port of MadAgent_v0 (stateless stub agent)."""

    def __init__(self, observation_size: int, action_size: int):
        self.observation_size = observation_size
        self.action_size = action_size
        self.is_burning_in = False
        # No parameters in the reference __init__ — nothing to initialize.

    def initialize(self):
        pass

    def report_new_episode(self):
        pass

    def report_SARS(self, observation, action, reward, new_observation,
                    is_terminal):
        pass

    def choose_action(self, observation):
        # Reference returns None; we return the identity pass-through as the
        # closest executable analogue of the stateless stub's data path.
        return mad_agent_v0_forward(observation)

    def __call__(self, x):
        return self.choose_action(x)


if __name__ == "__main__":
    # Small shapes implied by the module: batch=2, observation_size=32,
    # action_size=8 (action_size is unused by forward()).
    batch = 2
    observation_size = 32
    action_size = 8

    key = jax.random.PRNGKey(0)
    observation = jax.random.normal(
        key, (batch, observation_size), dtype=jnp.float32
    )
    obs_host = jax.device_get(observation)  # host copy for comparison

    agent = MadAgentV0(observation_size, action_size)
    out = jax.block_until_ready(agent(observation))

    assert out.shape == (batch, observation_size)
    assert bool(jnp.all(out == jnp.asarray(obs_host)))

    # Also exercise the lane-dense, batch-tiled path at a modest shape
    # (512 * 32 elements -> viewed as [128, 128] inside the wrapper).
    obs2 = jax.random.normal(
        jax.random.PRNGKey(0), (512, observation_size), dtype=jnp.float32
    )
    obs2_host = jax.device_get(obs2)
    out2 = jax.block_until_ready(mad_agent_v0_forward(obs2))

    assert out2.shape == (512, observation_size)
    assert bool(jnp.all(out2 == jnp.asarray(obs2_host)))

    print("KERNEL_OK")
</pallas_src>

<mosaic_0001>
module attributes {stable_mosaic.version = 11 : i64} {
  func.func @_identity_copy_kernel(%arg0: i32, %arg1: memref<2x32xf32, #tpu.memory_space<vmem>>, %arg2: memref<2x32xf32, #tpu.memory_space<vmem>>) attributes {dimension_semantics = [#tpu.dimension_semantics<parallel>], iteration_bounds = array<i64: 1>, scalar_prefetch = 0 : i64, scratch_operands = 0 : i64, tpu.core_type = #tpu.core_type<tc>, window_params = [{transform_indices = @transform_0, window_bounds = array<i64: 2, 32>}, {transform_indices = @transform_1, window_bounds = array<i64: 2, 32>}]} {
    %c0 = arith.constant 0 : index
    %c0_0 = arith.constant 0 : index
    %0 = vector.load %arg1[%c0, %c0_0] : memref<2x32xf32, #tpu.memory_space<vmem>>, vector<2x32xf32>
    %c0_1 = arith.constant 0 : index
    %c0_2 = arith.constant 0 : index
    %1 = vector.load %arg2[%c0_1, %c0_2] : memref<2x32xf32, #tpu.memory_space<vmem>>, vector<2x32xf32>
    tpu.vector_store %arg2[%c0_1, %c0_2], %0 {strides = array<i32>} : memref<2x32xf32, #tpu.memory_space<vmem>>, vector<2x32xf32>,
    return
  }
  func.func @transform_0(%arg0: i32) -> (i32, i32) {
    %c0_i32 = arith.constant 0 : i32
    %c0_i32_0 = arith.constant 0 : i32
    return %arg0, %c0_i32 : i32, i32
  }
  func.func @transform_1(%arg0: i32) -> (i32, i32) {
    %c0_i32 = arith.constant 0 : i32
    %c0_i32_0 = arith.constant 0 : i32
    return %arg0, %c0_i32 : i32, i32
  }
}

</mosaic_0001>

<bundles_post_ra>
// kernel: _forward_impl.1
= control target key start
LH: loop header
LB: loop body
LE: loop exit
PB: predicated region body
PF: predicated region fallthrough
CT: control target
= control target key end

     0   :  { %6 = vsyncpa [#allocation3], 0  ;;  %s115_s0 = inlined_call_operand.hbm [shape: f32[2,32], index: 0, kind: input, shape index: {}, may-alias: {0,1}]   ;;  %s116_s1 = inlined_call_operand.hbm [shape: f32[2,32], index: 1, kind: output, shape index: {}, may-alias: {0,1}]  }
   0x1   :  { %7 = vsyncpa [#allocation4], 0  ;;  %s13_s8 = sshll.u32 %s115_s0, 4  ;;  %s97_s9 = smov [#allocation2]   ;;  %s14_s8 = int_to_ptr.hbm [resolvable:$true] %s13_s8 }
   0x2   :  { %s15_s10 = sshll.u32 %s97_s9, 4  ;;  %s16_s10 = int_to_ptr.vmem [resolvable:$true] %s15_s10 }
   0x3   :  { %18 = dma.hbm_to_vmem [thread:$0]  %s14_s8, 32, %s16_s10, [#allocation3]  }
   0x4   :  { %93 = dma.done.wait [#allocation3], 32  }
   0x5   :  { %94 = vsyncadd [#allocation3], 4294967264  ;;  %s98_s11 = smov [#allocation5]   ;;  %s33_s15 = sshll.u32 %s116_s1, 4  ;;  %vm24_vm0 = vcmask 254976   ;;  %s34_s15 = int_to_ptr.hbm [resolvable:$true] %s33_s15 }
   0x6   :  { %s31_s12 = sshll.u32 %s98_s11, 4  ;;  %v23_v0 = vld [vmem:[#allocation2] sm:$0x3]  ;;  %s32_s12 = int_to_ptr.vmem [resolvable:$true] %s31_s12 }
   0x7   :  { %25 = vst.msk [vmem:[#allocation5] sm:$0x3] %vm24_vm0, %v23_v0 }
   0x8   :  { %36 = dma.vmem_to_hbm [thread:$0]  %s32_s12, 32, %s34_s15, [#allocation4]  }
   0x9   :  { %95 = dma.done.wait [#allocation4], 32  }
   0xa   :  { %96 = vsyncadd [#allocation4], 4294967264 }
   0xb   :  { %41 = vsyncpa [#allocation3], 1 }
   0xc   :  { %42 = vsyncpa [#allocation4], 1 }

</bundles_post_ra>
